<compile_context>
chip_gen: v6e
topology: v6e:2x2x1
jax: 0.10.0
libtpu: 0.0.40
codegen_flags: <defaults>
</compile_context>

<pallas_src>
from functools import partial

import jax
import jax.numpy as jnp
from jax.experimental import pallas as pl
from jax.experimental.pallas import tpu as pltpu

# ----------------------------- config (small) --------------------------------
CFG = dict(
    vocab_size=64,
    context_length=8,
    emb_dim=32,
    n_heads=4,
    n_layers=2,
    drop_rate=0.0,
    qkv_bias=False,
)

EPS = 1e-5


# ----------------------------- in-kernel math ---------------------------------
def _layernorm(x, scale, shift):
    # matches the spec's LayerNorm: mean over last dim, torch.var default
    # (unbiased=True, ddof=1); rsqrt goes to the EUP slot.
    d = x.shape[-1]
    mean = jnp.mean(x, axis=-1, keepdims=True)
    var = jnp.sum((x - mean) ** 2, axis=-1, keepdims=True) * (1.0 / (d - 1))
    return scale * ((x - mean) * jax.lax.rsqrt(var + EPS)) + shift


def _gelu(x):
    return 0.5 * x * (1.0 + jnp.tanh(jnp.sqrt(2.0 / jnp.pi) * (x + 0.044715 * x ** 3)))


# ----------------------- fused transformer-stack kernel ------------------------
def gpt_layers_kernel(x0_ref, wqkv_ref, wo_ref, vecs_ref, w1_ref, b1_ref,
                      w2_ref, fn_ref, xf_ref, x_res, *, num_heads):
    l = pl.program_id(1)
    n_layers = pl.num_programs(1)

    # layer 0 of this batch row: load embeddings into the resident residual stream
    @pl.when(l == 0)
    def _():
        x_res[...] = x0_ref[...]

    x = x_res[...]                                   # (T, D) f32
    T, D = x.shape
    H = num_heads
    hd = D // H
    scale = 1.0 / (hd ** 0.5)                        # folded into q

    ln1_s = vecs_ref[0:1, :]
    ln1_b = vecs_ref[1:2, :]
    bo    = vecs_ref[2:3, :]
    ln2_s = vecs_ref[3:4, :]
    ln2_b = vecs_ref[4:5, :]
    b2    = vecs_ref[5:6, :]

    # ---- attention sub-layer (pre-norm), fused QKV projection ----
    xn = _layernorm(x, ln1_s, ln1_b)
    qkv = jnp.dot(xn.astype(jnp.bfloat16), wqkv_ref[...],
                  preferred_element_type=jnp.float32)          # (T, 3D) f32
    q = qkv[:, :D] * scale
    k = qkv[:, D:2 * D]
    v = qkv[:, 2 * D:]
    q3 = q.reshape(T, H, hd)
    k3 = k.reshape(T, H, hd)
    v3 = v.reshape(T, H, hd)

    s = jnp.einsum('qhd,khd->hqk', q3, k3,
                   preferred_element_type=jnp.float32)         # (H, T, T)
    # causal mask built in-kernel (cheap VPU filler; no HBM mask array)
    row = jax.lax.broadcasted_iota(jnp.int32, (T, T), 0)
    col = jax.lax.broadcasted_iota(jnp.int32, (T, T), 1)
    s = jnp.where((col <= row)[None, :, :], s, -jnp.inf)

    m = jnp.max(s, axis=-1, keepdims=True)
    e = jnp.exp(s - m)
    p = e * pl.reciprocal(jnp.sum(e, axis=-1, keepdims=True), approx=True)

    ctx = jnp.einsum('hqk,khd->qhd', p, v3,
                     preferred_element_type=jnp.float32).reshape(T, D)
    x = x + jnp.dot(ctx.astype(jnp.bfloat16), wo_ref[...],
                    preferred_element_type=jnp.float32) + bo

    # ---- feed-forward sub-layer (pre-norm) ----
    xn2 = _layernorm(x, ln2_s, ln2_b)
    h1 = _gelu(jnp.dot(xn2.astype(jnp.bfloat16), w1_ref[...],
                       preferred_element_type=jnp.float32) + b1_ref[...])
    x = x + jnp.dot(h1.astype(jnp.bfloat16), w2_ref[...],
                    preferred_element_type=jnp.float32) + b2

    x_res[...] = x                                   # carry residual to next layer

    # ---- final LayerNorm, only on the last layer ----
    @pl.when(l == n_layers - 1)
    def _():
        xf_ref[...] = _layernorm(x, fn_ref[0:1, :], fn_ref[1:2, :])


# ------------------------------ output-head kernel ------------------------------
def head_kernel(x_ref, w_ref, o_ref):
    o_ref[...] = jnp.dot(x_ref[...], w_ref[...],
                         preferred_element_type=jnp.float32)


# ------------------------------ pallas wrappers ---------------------------------
def make_layers_call(B, T, D, H, L):
    F = 4 * D
    hd = D // H
    per_b = lambda b, l: (b, 0, 0)
    per_l = lambda b, l: (l, 0, 0)
    const = lambda b, l: (0, 0)

    # advisory cost estimate so XLA schedules surrounding glue sensibly
    mm_flops = 2 * T * D * (3 * D) + 2 * T * D * D + 2 * T * D * F + 2 * T * F * D
    attn_flops = 4 * H * T * T * hd
    flops = B * L * (mm_flops + attn_flops)
    transcendentals = B * L * (T * F + H * T * T)
    bytes_accessed = (L * (3 * D * D + D * D + 2 * D * F) * 2   # bf16 weights
                      + L * (6 * D + F) * 4                     # f32 small vectors
                      + 2 * B * T * D * 4)                      # x in / xf out

    return pl.pallas_call(
        partial(gpt_layers_kernel, num_heads=H),
        out_shape=jax.ShapeDtypeStruct((B, T, D), jnp.float32),
        grid=(B, L),
        in_specs=[
            pl.BlockSpec((None, T, D), per_b),        # embeddings (read at l==0)
            pl.BlockSpec((None, D, 3 * D), per_l),    # fused Wq|Wk|Wv (bf16)
            pl.BlockSpec((None, D, D), per_l),        # out-proj weight (bf16)
            pl.BlockSpec((None, 6, D), per_l),        # ln1 s/b, bo, ln2 s/b, b2 (f32)
            pl.BlockSpec((None, D, F), per_l),        # ff W1 (bf16)
            pl.BlockSpec((None, 1, F), per_l),        # ff b1 (f32)
            pl.BlockSpec((None, F, D), per_l),        # ff W2 (bf16)
            pl.BlockSpec((2, D), const),              # final norm scale/shift
        ],
        out_specs=pl.BlockSpec((None, T, D), per_b),  # final-normed residual
        scratch_shapes=[pltpu.VMEM((T, D), jnp.float32)],   # resident residual stream
        compiler_params=pltpu.CompilerParams(
            dimension_semantics=("parallel", "arbitrary"),
            vmem_limit_bytes=32 * 1024 * 1024),
        cost_estimate=pl.CostEstimate(flops=flops,
                                      transcendentals=transcendentals,
                                      bytes_accessed=bytes_accessed),
    )


def make_head_call(BT, D, Vpad, tile_v=128):
    return pl.pallas_call(
        head_kernel,
        out_shape=jax.ShapeDtypeStruct((BT, Vpad), jnp.float32),
        grid=(Vpad // tile_v,),
        in_specs=[pl.BlockSpec((BT, D), lambda j: (0, 0)),
                  pl.BlockSpec((D, tile_v), lambda j: (0, j))],
        out_specs=pl.BlockSpec((BT, tile_v), lambda j: (0, j)),   # lane-dense tiles
        compiler_params=pltpu.CompilerParams(
            dimension_semantics=("parallel",)),
    )


# ------------------------------ parameter init ---------------------------------
def init_params(cfg, key):
    D = cfg['emb_dim']; V = cfg['vocab_size']
    L = cfg['n_layers']; C = cfg['context_length']
    F = 4 * D
    keys = iter(jax.random.split(key, 64))
    nrm = lambda shp: (0.02 * jax.random.normal(next(keys), shp)).astype(jnp.float32)

    tok_emb = nrm((V, D))
    # nn.Embedding(vocab_size, emb_dim, emb_dim): 3rd positional arg is
    # padding_idx=emb_dim; torch zero-initializes that embedding row.
    tok_emb = tok_emb.at[D].set(0.0)
    pos_emb = nrm((C, D))

    # fused QKV weight: wq | wk | wv concatenated along the output axis -> (L, D, 3D)
    wqkv = jnp.stack([jnp.concatenate([nrm((D, D)) for _ in range(3)], axis=1)
                      for _ in range(L)]).astype(jnp.bfloat16)
    wo = jnp.stack([nrm((D, D)) for _ in range(L)]).astype(jnp.bfloat16)
    w1 = jnp.stack([nrm((D, F)) for _ in range(L)]).astype(jnp.bfloat16)
    w2 = jnp.stack([nrm((F, D)) for _ in range(L)]).astype(jnp.bfloat16)
    b1 = jnp.stack([nrm((1, F)) for _ in range(L)])                 # (L, 1, 4D) f32

    def layer_vecs():
        return jnp.stack([jnp.ones((D,), jnp.float32),   # ln1 scale
                          jnp.zeros((D,), jnp.float32),  # ln1 shift
                          nrm((D,)),                     # out_proj bias
                          jnp.ones((D,), jnp.float32),   # ln2 scale
                          jnp.zeros((D,), jnp.float32),  # ln2 shift
                          nrm((D,))])                    # ff second bias
    vecs = jnp.stack([layer_vecs() for _ in range(L)])              # (L, 6, D) f32

    fn = jnp.stack([jnp.ones((D,), jnp.float32),
                    jnp.zeros((D,), jnp.float32)])                  # (2, D) f32
    w_out = nrm((D, V)).astype(jnp.bfloat16)

    return dict(tok_emb=tok_emb, pos_emb=pos_emb, wqkv=wqkv, wo=wo, vecs=vecs,
                w1=w1, b1=b1, w2=w2, fn=fn, w_out=w_out)


# ------------------------------ model forward -----------------------------------
def gpt_forward(params, in_idx, cfg):
    B, T = in_idx.shape
    D, H, V, L = cfg['emb_dim'], cfg['n_heads'], cfg['vocab_size'], cfg['n_layers']
    BT = B * T
    Vpad = ((V + 127) // 128) * 128

    # embedding gather + positional add (XLA glue); drop_emb is identity (eval)
    x = params['tok_emb'][in_idx] + params['pos_emb'][:T][None, :, :]   # (B, T, D)

    layers_call = make_layers_call(B, T, D, H, L)
    xf = layers_call(x, params['wqkv'], params['wo'], params['vecs'],
                     params['w1'], params['b1'], params['w2'], params['fn'])

    # output head: vocab-tiled, lane-dense (vocab padded to a multiple of 128)
    w_out_p = jnp.pad(params['w_out'], ((0, 0), (0, Vpad - V)))
    head_call = make_head_call(BT, D, Vpad)
    logits_p = head_call(xf.reshape(BT, D).astype(jnp.bfloat16), w_out_p)
    return logits_p[:, :V].reshape(B, T, V)


# ------------------------------ pure-JAX reference -------------------------------
def gpt_forward_ref(params, in_idx, cfg):
    B, T = in_idx.shape
    D, H, L = cfg['emb_dim'], cfg['n_heads'], cfg['n_layers']
    hd = D // H
    bf, f32 = jnp.bfloat16, jnp.float32
    x = params['tok_emb'][in_idx] + params['pos_emb'][:T][None, :, :]

    def ln(x, s, b):
        mean = jnp.mean(x, axis=-1, keepdims=True)
        var = jnp.sum((x - mean) ** 2, axis=-1, keepdims=True) / (x.shape[-1] - 1)
        return s * (x - mean) / jnp.sqrt(var + EPS) + b

    causal_ok = jnp.tril(jnp.ones((T, T), bool))

    for l in range(L):
        wqkv, wo = params['wqkv'][l], params['wo'][l]
        ln1_s, ln1_b, bo, ln2_s, ln2_b, b2 = params['vecs'][l]
        w1, b1, w2 = params['w1'][l], params['b1'][l, 0], params['w2'][l]

        xn = ln(x, ln1_s, ln1_b)
        qkv = jnp.einsum('btd,de->bte', xn.astype(bf), wqkv,
                         preferred_element_type=f32)
        q = (qkv[..., :D] * (1.0 / (hd ** 0.5))).reshape(B, T, H, hd).transpose(0, 2, 1, 3)
        k = qkv[..., D:2 * D].reshape(B, T, H, hd).transpose(0, 2, 1, 3)
        v = qkv[..., 2 * D:].reshape(B, T, H, hd).transpose(0, 2, 1, 3)
        s = jnp.einsum('bhqd,bhkd->bhqk', q, k, preferred_element_type=f32)
        s = jnp.where(causal_ok[None, None], s, -jnp.inf)
        p = jax.nn.softmax(s, axis=-1)
        ctx = jnp.einsum('bhqk,bhkd->bhqd', p, v, preferred_element_type=f32)
        ctx = ctx.transpose(0, 2, 1, 3).reshape(B, T, D)
        x = x + jnp.einsum('btd,de->bte', ctx.astype(bf), wo,
                           preferred_element_type=f32) + bo

        xn2 = ln(x, ln2_s, ln2_b)
        h1 = jnp.einsum('btd,df->btf', xn2.astype(bf), w1,
                        preferred_element_type=f32) + b1
        h1 = 0.5 * h1 * (1 + jnp.tanh(jnp.sqrt(2.0 / jnp.pi) * (h1 + 0.044715 * h1 ** 3)))
        x = x + jnp.einsum('btf,fd->btd', h1.astype(bf), w2,
                           preferred_element_type=f32) + b2

    xn = ln(x, params['fn'][0], params['fn'][1])
    return jnp.einsum('btd,dv->btv', xn.astype(bf), params['w_out'],
                      preferred_element_type=f32)


# ----------------------------------- main ----------------------------------------
if __name__ == "__main__":
    key = jax.random.PRNGKey(0)
    pkey, ikey = jax.random.split(key)
    params = init_params(CFG, pkey)

    B, T = 2, CFG['context_length']
    in_idx = jax.random.randint(ikey, (B, T), 0, CFG['vocab_size'], dtype=jnp.int32)

    fwd = jax.jit(partial(gpt_forward, cfg=CFG))
    logits = jax.block_until_ready(fwd(params, in_idx))

    ref = gpt_forward_ref(params, in_idx, CFG)
    assert logits.shape == (B, T, CFG['vocab_size'])
    # tolerance covers the EUP approximate-reciprocal softmax denominator
    assert jnp.allclose(logits, ref, atol=5e-3, rtol=5e-3), "mismatch vs JAX reference"

    print("KERNEL_OK")
</pallas_src>

<mosaic_0001>
module attributes {stable_mosaic.version = 11 : i64} {
  func.func @head_kernel(%arg0: i32, %arg1: memref<16x32xbf16, #tpu.memory_space<vmem>>, %arg2: memref<32x128xbf16, #tpu.memory_space<vmem>>, %arg3: memref<16x128xf32, #tpu.memory_space<vmem>>) attributes {dimension_semantics = [#tpu.dimension_semantics<parallel>], iteration_bounds = array<i64: 1>, scalar_prefetch = 0 : i64, scratch_operands = 0 : i64, tpu.core_type = #tpu.core_type<tc>, window_params = [{pipeline_mode = #tpu.pipeline_mode<synchronous>, transform_indices = @transform_0, window_bounds = array<i64: 16, 32>}, {transform_indices = @transform_1, window_bounds = array<i64: 32, 128>}, {transform_indices = @transform_2, window_bounds = array<i64: 16, 128>}]} {
    %c0 = arith.constant 0 : index
    %c0_0 = arith.constant 0 : index
    %0 = vector.load %arg1[%c0, %c0_0] : memref<16x32xbf16, #tpu.memory_space<vmem>>, vector<16x32xbf16>
    %c0_1 = arith.constant 0 : index
    %c0_2 = arith.constant 0 : index
    %1 = vector.load %arg2[%c0_1, %c0_2] : memref<32x128xbf16, #tpu.memory_space<vmem>>, vector<32x128xbf16>
    %cst = arith.constant dense<0.000000e+00> : vector<16x128xf32>
    %2 = tpu.matmul %0, %1, %cst {dimension_numbers = #tpu.dot_dimension_numbers<[1], [0], [0], [1], [0, 0, 1, 1], [], []>} : vector<16x32xbf16>, vector<32x128xbf16>, vector<16x128xf32> -> vector<16x128xf32>
    %c0_3 = arith.constant 0 : index
    %c0_4 = arith.constant 0 : index
    %3 = vector.load %arg3[%c0_3, %c0_4] : memref<16x128xf32, #tpu.memory_space<vmem>>, vector<16x128xf32>
    tpu.vector_store %arg3[%c0_3, %c0_4], %2 {strides = array<i32>} : memref<16x128xf32, #tpu.memory_space<vmem>>, vector<16x128xf32>,
    return
  }
  func.func @transform_0(%arg0: i32) -> (i32, i32) {
    %c0_i32 = arith.constant 0 : i32
    %c0_i32_0 = arith.constant 0 : i32
    %c0_i32_1 = arith.constant 0 : i32
    return %c0_i32, %c0_i32_0 : i32, i32
  }
  func.func @transform_1(%arg0: i32) -> (i32, i32) {
    %c0_i32 = arith.constant 0 : i32
    %c0_i32_0 = arith.constant 0 : i32
    return %c0_i32, %arg0 : i32, i32
  }
  func.func @transform_2(%arg0: i32) -> (i32, i32) {
    %c0_i32 = arith.constant 0 : i32
    %c0_i32_0 = arith.constant 0 : i32
    return %c0_i32, %arg0 : i32, i32
  }
}

module attributes {stable_mosaic.version = 11 : i64} {
  func.func @gpt_layers_kernel(%arg0: i32, %arg1: i32, %arg2: memref<1x8x32xf32, #tpu.memory_space<vmem>>, %arg3: memref<1x32x96xbf16, #tpu.memory_space<vmem>>, %arg4: memref<1x32x32xbf16, #tpu.memory_space<vmem>>, %arg5: memref<1x6x32xf32, #tpu.memory_space<vmem>>, %arg6: memref<1x32x128xbf16, #tpu.memory_space<vmem>>, %arg7: memref<1x1x128xf32, #tpu.memory_space<vmem>>, %arg8: memref<1x128x32xbf16, #tpu.memory_space<vmem>>, %arg9: memref<2x32xf32, #tpu.memory_space<vmem>>, %arg10: memref<1x8x32xf32, #tpu.memory_space<vmem>>, %arg11: memref<8x32xf32, #tpu.memory_space<vmem>>) attributes {dimension_semantics = [#tpu.dimension_semantics<parallel>, #tpu.dimension_semantics<arbitrary>], iteration_bounds = array<i64: 2, 2>, scalar_prefetch = 0 : i64, scratch_operands = 1 : i64, tpu.core_type = #tpu.core_type<tc>, window_params = [{transform_indices = @transform_0, window_bounds = array<i64: 1, 8, 32>}, {transform_indices = @transform_1, window_bounds = array<i64: 1, 32, 96>}, {transform_indices = @transform_2, window_bounds = array<i64: 1, 32, 32>}, {transform_indices = @transform_3, window_bounds = array<i64: 1, 6, 32>}, {transform_indices = @transform_4, window_bounds = array<i64: 1, 32, 128>}, {transform_indices = @transform_5, window_bounds = array<i64: 1, 1, 128>}, {transform_indices = @transform_6, window_bounds = array<i64: 1, 128, 32>}, {pipeline_mode = #tpu.pipeline_mode<synchronous>, transform_indices = @transform_7, window_bounds = array<i64: 2, 32>}, {transform_indices = @transform_8, window_bounds = array<i64: 1, 8, 32>}]} {
    %c0_i32 = arith.constant 0 : i32
    %0 = arith.cmpi eq, %arg1, %c0_i32 : i32
    %1 = arith.extui %0 : i1 to i32
    %c0_i32_0 = arith.constant 0 : i32
    %2 = arith.cmpi ne, %1, %c0_i32_0 : i32
    scf.if %2 {
      %c0_56 = arith.constant 0 : index
      %c0_57 = arith.constant 0 : index
      %c0_58 = arith.constant 0 : index
      %134 = vector.load %arg2[%c0_56, %c0_57, %c0_58] : memref<1x8x32xf32, #tpu.memory_space<vmem>>, vector<1x8x32xf32>
      %135 = vector.shape_cast %134 : vector<1x8x32xf32> to vector<8x32xf32>
      %c0_59 = arith.constant 0 : index
      %c0_60 = arith.constant 0 : index
      %136 = vector.load %arg11[%c0_59, %c0_60] : memref<8x32xf32, #tpu.memory_space<vmem>>, vector<8x32xf32>
      tpu.vector_store %arg11[%c0_59, %c0_60], %135 {strides = array<i32>} : memref<8x32xf32, #tpu.memory_space<vmem>>, vector<8x32xf32>,
    } else {
    }
    %c0 = arith.constant 0 : index
    %c0_1 = arith.constant 0 : index
    %3 = vector.load %arg11[%c0, %c0_1] : memref<8x32xf32, #tpu.memory_space<vmem>>, vector<8x32xf32>
    %c0_2 = arith.constant 0 : index
    %c0_3 = arith.constant 0 : index
    %c0_4 = arith.constant 0 : index
    %4 = vector.load %arg5[%c0_2, %c0_3, %c0_4] : memref<1x6x32xf32, #tpu.memory_space<vmem>>, vector<1x1x32xf32>
    %5 = vector.shape_cast %4 : vector<1x1x32xf32> to vector<1x32xf32>
    %c0_5 = arith.constant 0 : index
    %c1 = arith.constant 1 : index
    %c0_6 = arith.constant 0 : index
    %6 = vector.load %arg5[%c0_5, %c1, %c0_6] : memref<1x6x32xf32, #tpu.memory_space<vmem>>, vector<1x1x32xf32>
    %7 = vector.shape_cast %6 : vector<1x1x32xf32> to vector<1x32xf32>
    %c0_7 = arith.constant 0 : index
    %c2 = arith.constant 2 : index
    %c0_8 = arith.constant 0 : index
    %8 = vector.load %arg5[%c0_7, %c2, %c0_8] : memref<1x6x32xf32, #tpu.memory_space<vmem>>, vector<1x1x32xf32>
    %9 = vector.shape_cast %8 : vector<1x1x32xf32> to vector<1x32xf32>
    %c0_9 = arith.constant 0 : index
    %c3 = arith.constant 3 : index
    %c0_10 = arith.constant 0 : index
    %10 = vector.load %arg5[%c0_9, %c3, %c0_10] : memref<1x6x32xf32, #tpu.memory_space<vmem>>, vector<1x1x32xf32>
    %11 = vector.shape_cast %10 : vector<1x1x32xf32> to vector<1x32xf32>
    %c0_11 = arith.constant 0 : index
    %c4 = arith.constant 4 : index
    %c0_12 = arith.constant 0 : index
    %12 = vector.load %arg5[%c0_11, %c4, %c0_12] : memref<1x6x32xf32, #tpu.memory_space<vmem>>, vector<1x1x32xf32>
    %13 = vector.shape_cast %12 : vector<1x1x32xf32> to vector<1x32xf32>
    %c0_13 = arith.constant 0 : index
    %c5 = arith.constant 5 : index
    %c0_14 = arith.constant 0 : index
    %14 = vector.load %arg5[%c0_13, %c5, %c0_14] : memref<1x6x32xf32, #tpu.memory_space<vmem>>, vector<1x1x32xf32>
    %15 = vector.shape_cast %14 : vector<1x1x32xf32> to vector<1x32xf32>
    %cst = arith.constant dense<0.000000e+00> : vector<8xf32>
    %16 = vector.multi_reduction <add>, %3, %cst [1] : vector<8x32xf32> to vector<8xf32>
    %17 = vector.shape_cast %16 : vector<8xf32> to vector<8x1xf32>
    %cst_15 = arith.constant 3.200000e+01 : f32
    %18 = vector.broadcast %cst_15 : f32 to vector<8x1xf32>
    %19 = arith.divf %17, %18 : vector<8x1xf32>
    %20 = vector.broadcast %19 : vector<8x1xf32> to vector<8x32xf32>
    %21 = arith.subf %3, %20 : vector<8x32xf32>
    %22 = arith.mulf %21, %21 : vector<8x32xf32>
    %cst_16 = arith.constant dense<0.000000e+00> : vector<8xf32>
    %23 = vector.multi_reduction <add>, %22, %cst_16 [1] : vector<8x32xf32> to vector<8xf32>
    %24 = vector.shape_cast %23 : vector<8xf32> to vector<8x1xf32>
    %cst_17 = arith.constant 0.0322580636 : f32
    %25 = vector.broadcast %cst_17 : f32 to vector<8x1xf32>
    %26 = arith.mulf %24, %25 : vector<8x1xf32>
    %27 = vector.broadcast %19 : vector<8x1xf32> to vector<8x32xf32>
    %28 = arith.subf %3, %27 : vector<8x32xf32>
    %cst_18 = arith.constant 9.99999974E-6 : f32
    %29 = vector.broadcast %cst_18 : f32 to vector<8x1xf32>
    %30 = arith.addf %26, %29 : vector<8x1xf32>
    %31 = math.rsqrt %30 : vector<8x1xf32>
    %32 = vector.broadcast %31 : vector<8x1xf32> to vector<8x32xf32>
    %33 = arith.mulf %28, %32 : vector<8x32xf32>
    %34 = vector.broadcast %5 : vector<1x32xf32> to vector<8x32xf32>
    %35 = arith.mulf %34, %33 : vector<8x32xf32>
    %36 = vector.broadcast %7 : vector<1x32xf32> to vector<8x32xf32>
    %37 = arith.addf %35, %36 : vector<8x32xf32>
    %38 = arith.truncf %37 : vector<8x32xf32> to vector<8x32xbf16>
    %c0_19 = arith.constant 0 : index
    %c0_20 = arith.constant 0 : index
    %c0_21 = arith.constant 0 : index
    %39 = vector.load %arg3[%c0_19, %c0_20, %c0_21] : memref<1x32x96xbf16, #tpu.memory_space<vmem>>, vector<1x32x96xbf16>
    %40 = vector.shape_cast %39 : vector<1x32x96xbf16> to vector<32x96xbf16>
    %cst_22 = arith.constant dense<0.000000e+00> : vector<8x96xf32>
    %41 = tpu.matmul %38, %40, %cst_22 {dimension_numbers = #tpu.dot_dimension_numbers<[1], [0], [0], [1], [0, 0, 1, 1], [], []>} : vector<8x32xbf16>, vector<32x96xbf16>, vector<8x96xf32> -> vector<8x96xf32>
    %42 = vector.extract_strided_slice %41 {offsets = [0, 0], sizes = [8, 32], strides = [1, 1]} : vector<8x96xf32> to vector<8x32xf32>
    %cst_23 = arith.constant 0.353553385 : f32
    %43 = vector.broadcast %cst_23 : f32 to vector<8x32xf32>
    %44 = arith.mulf %42, %43 : vector<8x32xf32>
    %45 = vector.extract_strided_slice %41 {offsets = [0, 32], sizes = [8, 32], strides = [1, 1]} : vector<8x96xf32> to vector<8x32xf32>
    %46 = vector.extract_strided_slice %41 {offsets = [0, 64], sizes = [8, 32], strides = [1, 1]} : vector<8x96xf32> to vector<8x32xf32>
    %47 = vector.shape_cast %44 : vector<8x32xf32> to vector<8x4x8xf32>
    %48 = vector.shape_cast %45 : vector<8x32xf32> to vector<8x4x8xf32>
    %49 = vector.shape_cast %46 : vector<8x32xf32> to vector<8x4x8xf32>
    "tpu.trace_start"() <{level = 10 : i32, message = "qhd,khd->hqk"}> : () -> ()
    %cst_24 = arith.constant dense<0.000000e+00> : vector<4x8x8xf32>
    %50 = tpu.matmul %47, %48, %cst_24 {dimension_numbers = #tpu.dot_dimension_numbers<[2], [2], [0], [0], [0, 1, 0, 0, 1, 0], [1], [1]>} : vector<8x4x8xf32>, vector<8x4x8xf32>, vector<4x8x8xf32> -> vector<4x8x8xf32>
    "tpu.trace_stop"() : () -> ()
    %51 = tpu.iota {dimensions = array<i32: 0>} : vector<8x8xi32>
    %52 = tpu.iota {dimensions = array<i32: 1>} : vector<8x8xi32>
    %53 = arith.cmpi sle, %52, %51 : vector<8x8xi32>
    %54 = vector.shape_cast %53 : vector<8x8xi1> to vector<1x8x8xi1>
    %cst_25 = arith.constant 0xFF800000 : f32
    %55 = vector.shape_cast %54 : vector<1x8x8xi1> to vector<1x8x8xi1>
    %56 = vector.broadcast %55 : vector<1x8x8xi1> to vector<4x8x8xi1>
    %57 = vector.broadcast %cst_25 : f32 to vector<4x8x8xf32>
    %58 = arith.select %56, %50, %57 : vector<4x8x8xi1>, vector<4x8x8xf32>
    %cst_26 = arith.constant dense<0xFF800000> : vector<4x8xf32>
    %59 = vector.multi_reduction <maximumf>, %58, %cst_26 [2] : vector<4x8x8xf32> to vector<4x8xf32>
    %60 = vector.shape_cast %59 : vector<4x8xf32> to vector<4x8x1xf32>
    %61 = vector.broadcast %60 : vector<4x8x1xf32> to vector<4x8x8xf32>
    %62 = arith.subf %58, %61 : vector<4x8x8xf32>
    %63 = math.exp %62 : vector<4x8x8xf32>
    %cst_27 = arith.constant dense<0.000000e+00> : vector<4x8xf32>
    %64 = vector.multi_reduction <add>, %63, %cst_27 [2] : vector<4x8x8xf32> to vector<4x8xf32>
    %65 = vector.shape_cast %64 : vector<4x8xf32> to vector<4x8x1xf32>
    %66 = tpu.reciprocal %65 {approx = true} : vector<4x8x1xf32> -> vector<4x8x1xf32>
    %67 = vector.broadcast %66 : vector<4x8x1xf32> to vector<4x8x8xf32>
    %68 = arith.mulf %63, %67 : vector<4x8x8xf32>
    "tpu.trace_start"() <{level = 10 : i32, message = "hqk,khd->qhd"}> : () -> ()
    %cst_28 = arith.constant dense<0.000000e+00> : vector<4x8x8xf32>
    %69 = tpu.matmul %49, %68, %cst_28 {dimension_numbers = #tpu.dot_dimension_numbers<[0], [2], [2], [1], [0, 1, 0, 2, 1, 1], [1], [0]>} : vector<8x4x8xf32>, vector<4x8x8xf32>, vector<4x8x8xf32> -> vector<4x8x8xf32>
    %70 = tpu.transpose %69, [2, 0, 1] : vector<4x8x8xf32> -> vector<8x4x8xf32>
    "tpu.trace_stop"() : () -> ()
    %71 = vector.shape_cast %70 : vector<8x4x8xf32> to vector<8x32xf32>
    %72 = arith.truncf %71 : vector<8x32xf32> to vector<8x32xbf16>
    %c0_29 = arith.constant 0 : index
    %c0_30 = arith.constant 0 : index
    %c0_31 = arith.constant 0 : index
    %73 = vector.load %arg4[%c0_29, %c0_30, %c0_31] : memref<1x32x32xbf16, #tpu.memory_space<vmem>>, vector<1x32x32xbf16>
    %74 = vector.shape_cast %73 : vector<1x32x32xbf16> to vector<32x32xbf16>
    %cst_32 = arith.constant dense<0.000000e+00> : vector<8x32xf32>
    %75 = tpu.matmul %72, %74, %cst_32 {dimension_numbers = #tpu.dot_dimension_numbers<[1], [0], [0], [1], [0, 0, 1, 1], [], []>} : vector<8x32xbf16>, vector<32x32xbf16>, vector<8x32xf32> -> vector<8x32xf32>
    %76 = arith.addf %3, %75 : vector<8x32xf32>
    %77 = vector.broadcast %9 : vector<1x32xf32> to vector<8x32xf32>
    %78 = arith.addf %76, %77 : vector<8x32xf32>
    %cst_33 = arith.constant dense<0.000000e+00> : vector<8xf32>
    %79 = vector.multi_reduction <add>, %78, %cst_33 [1] : vector<8x32xf32> to vector<8xf32>
    %80 = vector.shape_cast %79 : vector<8xf32> to vector<8x1xf32>
    %cst_34 = arith.constant 3.200000e+01 : f32
    %81 = vector.broadcast %cst_34 : f32 to vector<8x1xf32>
    %82 = arith.divf %80, %81 : vector<8x1xf32>
    %83 = vector.broadcast %82 : vector<8x1xf32> to vector<8x32xf32>
    %84 = arith.subf %78, %83 : vector<8x32xf32>
    %85 = arith.mulf %84, %84 : vector<8x32xf32>
    %cst_35 = arith.constant dense<0.000000e+00> : vector<8xf32>
    %86 = vector.multi_reduction <add>, %85, %cst_35 [1] : vector<8x32xf32> to vector<8xf32>
    %87 = vector.shape_cast %86 : vector<8xf32> to vector<8x1xf32>
    %cst_36 = arith.constant 0.0322580636 : f32
    %88 = vector.broadcast %cst_36 : f32 to vector<8x1xf32>
    %89 = arith.mulf %87, %88 : vector<8x1xf32>
    %90 = vector.broadcast %82 : vector<8x1xf32> to vector<8x32xf32>
    %91 = arith.subf %78, %90 : vector<8x32xf32>
    %cst_37 = arith.constant 9.99999974E-6 : f32
    %92 = vector.broadcast %cst_37 : f32 to vector<8x1xf32>
    %93 = arith.addf %89, %92 : vector<8x1xf32>
    %94 = math.rsqrt %93 : vector<8x1xf32>
    %95 = vector.broadcast %94 : vector<8x1xf32> to vector<8x32xf32>
    %96 = arith.mulf %91, %95 : vector<8x32xf32>
    %97 = vector.broadcast %11 : vector<1x32xf32> to vector<8x32xf32>
    %98 = arith.mulf %97, %96 : vector<8x32xf32>
    %99 = vector.broadcast %13 : vector<1x32xf32> to vector<8x32xf32>
    %100 = arith.addf %98, %99 : vector<8x32xf32>
    %101 = arith.truncf %100 : vector<8x32xf32> to vector<8x32xbf16>
    %c0_38 = arith.constant 0 : index
    %c0_39 = arith.constant 0 : index
    %c0_40 = arith.constant 0 : index
    %102 = vector.load %arg6[%c0_38, %c0_39, %c0_40] : memref<1x32x128xbf16, #tpu.memory_space<vmem>>, vector<1x32x128xbf16>
    %103 = vector.shape_cast %102 : vector<1x32x128xbf16> to vector<32x128xbf16>
    %cst_41 = arith.constant dense<0.000000e+00> : vector<8x128xf32>
    %104 = tpu.matmul %101, %103, %cst_41 {dimension_numbers = #tpu.dot_dimension_numbers<[1], [0], [0], [1], [0, 0, 1, 1], [], []>} : vector<8x32xbf16>, vector<32x128xbf16>, vector<8x128xf32> -> vector<8x128xf32>
    %c0_42 = arith.constant 0 : index
    %c0_43 = arith.constant 0 : index
    %c0_44 = arith.constant 0 : index
    %105 = vector.load %arg7[%c0_42, %c0_43, %c0_44] : memref<1x1x128xf32, #tpu.memory_space<vmem>>, vector<1x1x128xf32>
    %106 = vector.shape_cast %105 : vector<1x1x128xf32> to vector<1x128xf32>
    %107 = vector.broadcast %106 : vector<1x128xf32> to vector<8x128xf32>
    %108 = arith.addf %104, %107 : vector<8x128xf32>
    %cst_45 = arith.constant 5.000000e-01 : f32
    %109 = vector.broadcast %cst_45 : f32 to vector<8x128xf32>
    %110 = arith.mulf %109, %108 : vector<8x128xf32>
    %cst_46 = arith.constant 0.636619746 : f32
    %111 = math.sqrt %cst_46 : f32
    %112 = arith.mulf %108, %108 : vector<8x128xf32>
    %113 = arith.mulf %108, %112 : vector<8x128xf32>
    %cst_47 = arith.constant 4.471500e-02 : f32
    %114 = vector.broadcast %cst_47 : f32 to vector<8x128xf32>
    %115 = arith.mulf %114, %113 : vector<8x128xf32>
    %116 = arith.addf %108, %115 : vector<8x128xf32>
    %117 = vector.broadcast %111 : f32 to vector<8x128xf32>
    %118 = arith.mulf %117, %116 : vector<8x128xf32>
    %119 = math.tanh %118 : vector<8x128xf32>
    %cst_48 = arith.constant 1.000000e+00 : f32
    %120 = vector.broadcast %cst_48 : f32 to vector<8x128xf32>
    %121 = arith.addf %120, %119 : vector<8x128xf32>
    %122 = arith.mulf %110, %121 : vector<8x128xf32>
    %123 = arith.truncf %122 : vector<8x128xf32> to vector<8x128xbf16>
    %c0_49 = arith.constant 0 : index
    %c0_50 = arith.constant 0 : index
    %c0_51 = arith.constant 0 : index
    %124 = vector.load %arg8[%c0_49, %c0_50, %c0_51] : memref<1x128x32xbf16, #tpu.memory_space<vmem>>, vector<1x128x32xbf16>
    %125 = vector.shape_cast %124 : vector<1x128x32xbf16> to vector<128x32xbf16>
    %cst_52 = arith.constant dense<0.000000e+00> : vector<8x32xf32>
    %126 = tpu.matmul %123, %125, %cst_52 {dimension_numbers = #tpu.dot_dimension_numbers<[1], [0], [0], [1], [0, 0, 1, 1], [], []>} : vector<8x128xbf16>, vector<128x32xbf16>, vector<8x32xf32> -> vector<8x32xf32>
    %127 = arith.addf %78, %126 : vector<8x32xf32>
    %128 = vector.broadcast %15 : vector<1x32xf32> to vector<8x32xf32>
    %129 = arith.addf %127, %128 : vector<8x32xf32>
    %c0_53 = arith.constant 0 : index
    %c0_54 = arith.constant 0 : index
    %130 = vector.load %arg11[%c0_53, %c0_54] : memref<8x32xf32, #tpu.memory_space<vmem>>, vector<8x32xf32>
    tpu.vector_store %arg11[%c0_53, %c0_54], %129 {strides = array<i32>} : memref<8x32xf32, #tpu.memory_space<vmem>>, vector<8x32xf32>,
    %c1_i32 = arith.constant 1 : i32
    %131 = arith.cmpi eq, %arg1, %c1_i32 : i32
    %132 = arith.extui %131 : i1 to i32
    %c0_i32_55 = arith.constant 0 : i32
    %133 = arith.cmpi ne, %132, %c0_i32_55 : i32
    scf.if %133 {
      %c0_56 = arith.constant 0 : index
      %c0_57 = arith.constant 0 : index
      %134 = vector.load %arg9[%c0_56, %c0_57] : memref<2x32xf32, #tpu.memory_space<vmem>>, vector<1x32xf32>
      %c1_58 = arith.constant 1 : index
      %c0_59 = arith.constant 0 : index
      %135 = vector.load %arg9[%c1_58, %c0_59] : memref<2x32xf32, #tpu.memory_space<vmem>>, vector<1x32xf32>
      %cst_60 = arith.constant dense<0.000000e+00> : vector<8xf32>
      %136 = vector.multi_reduction <add>, %129, %cst_60 [1] : vector<8x32xf32> to vector<8xf32>
      %137 = vector.shape_cast %136 : vector<8xf32> to vector<8x1xf32>
      %cst_61 = arith.constant 3.200000e+01 : f32
      %138 = vector.broadcast %cst_61 : f32 to vector<8x1xf32>
      %139 = arith.divf %137, %138 : vector<8x1xf32>
      %140 = vector.broadcast %139 : vector<8x1xf32> to vector<8x32xf32>
      %141 = arith.subf %129, %140 : vector<8x32xf32>
      %142 = arith.mulf %141, %141 : vector<8x32xf32>
      %cst_62 = arith.constant dense<0.000000e+00> : vector<8xf32>
      %143 = vector.multi_reduction <add>, %142, %cst_62 [1] : vector<8x32xf32> to vector<8xf32>
      %144 = vector.shape_cast %143 : vector<8xf32> to vector<8x1xf32>
      %cst_63 = arith.constant 0.0322580636 : f32
      %145 = vector.broadcast %cst_63 : f32 to vector<8x1xf32>
      %146 = arith.mulf %144, %145 : vector<8x1xf32>
      %147 = vector.broadcast %139 : vector<8x1xf32> to vector<8x32xf32>
      %148 = arith.subf %129, %147 : vector<8x32xf32>
      %cst_64 = arith.constant 9.99999974E-6 : f32
      %149 = vector.broadcast %cst_64 : f32 to vector<8x1xf32>
      %150 = arith.addf %146, %149 : vector<8x1xf32>
      %151 = math.rsqrt %150 : vector<8x1xf32>
      %152 = vector.broadcast %151 : vector<8x1xf32> to vector<8x32xf32>
      %153 = arith.mulf %148, %152 : vector<8x32xf32>
      %154 = vector.broadcast %134 : vector<1x32xf32> to vector<8x32xf32>
      %155 = arith.mulf %154, %153 : vector<8x32xf32>
      %156 = vector.broadcast %135 : vector<1x32xf32> to vector<8x32xf32>
      %157 = arith.addf %155, %156 : vector<8x32xf32>
      %c0_65 = arith.constant 0 : index
      %c0_66 = arith.constant 0 : index
      %c0_67 = arith.constant 0 : index
      %158 = vector.load %arg10[%c0_65, %c0_66, %c0_67] : memref<1x8x32xf32, #tpu.memory_space<vmem>>, vector<1x8x32xf32>
      %159 = vector.shape_cast %158 : vector<1x8x32xf32> to vector<8x32xf32>
      %160 = vector.shape_cast %157 : vector<8x32xf32> to vector<1x8x32xf32>
      tpu.vector_store %arg10[%c0_65, %c0_66, %c0_67], %160 {strides = array<i32>} : memref<1x8x32xf32, #tpu.memory_space<vmem>>, vector<1x8x32xf32>,
    } else {
    }
    return
  }
  func.func @transform_0(%arg0: i32, %arg1: i32) -> (i32, i32, i32) {
    %c0_i32 = arith.constant 0 : i32
    %c0_i32_0 = arith.constant 0 : i32
    %c0_i32_1 = arith.constant 0 : i32
    return %arg0, %c0_i32, %c0_i32_0 : i32, i32, i32
  }
  func.func @transform_1(%arg0: i32, %arg1: i32) -> (i32, i32, i32) {
    %c0_i32 = arith.constant 0 : i32
    %c0_i32_0 = arith.constant 0 : i32
    %c0_i32_1 = arith.constant 0 : i32
    return %arg1, %c0_i32, %c0_i32_0 : i32, i32, i32
  }
  func.func @transform_2(%arg0: i32, %arg1: i32) -> (i32, i32, i32) {
    %c0_i32 = arith.constant 0 : i32
    %c0_i32_0 = arith.constant 0 : i32
    %c0_i32_1 = arith.constant 0 : i32
    return %arg1, %c0_i32, %c0_i32_0 : i32, i32, i32
  }
  func.func @transform_3(%arg0: i32, %arg1: i32) -> (i32, i32, i32) {
    %c0_i32 = arith.constant 0 : i32
    %c0_i32_0 = arith.constant 0 : i32
    %c0_i32_1 = arith.constant 0 : i32
    return %arg1, %c0_i32, %c0_i32_0 : i32, i32, i32
  }
  func.func @transform_4(%arg0: i32, %arg1: i32) -> (i32, i32, i32) {
    %c0_i32 = arith.constant 0 : i32
    %c0_i32_0 = arith.constant 0 : i32
    %c0_i32_1 = arith.constant 0 : i32
    return %arg1, %c0_i32, %c0_i32_0 : i32, i32, i32
  }
  func.func @transform_5(%arg0: i32, %arg1: i32) -> (i32, i32, i32) {
    %c0_i32 = arith.constant 0 : i32
    %c0_i32_0 = arith.constant 0 : i32
    %c0_i32_1 = arith.constant 0 : i32
    return %arg1, %c0_i32, %c0_i32_0 : i32, i32, i32
  }
  func.func @transform_6(%arg0: i32, %arg1: i32) -> (i32, i32, i32) {
    %c0_i32 = arith.constant 0 : i32
    %c0_i32_0 = arith.constant 0 : i32
    %c0_i32_1 = arith.constant 0 : i32
    return %arg1, %c0_i32, %c0_i32_0 : i32, i32, i32
  }
  func.func @transform_7(%arg0: i32, %arg1: i32) -> (i32, i32) {
    %c0_i32 = arith.constant 0 : i32
    %c0_i32_0 = arith.constant 0 : i32
    %c0_i32_1 = arith.constant 0 : i32
    return %c0_i32, %c0_i32_0 : i32, i32
  }
  func.func @transform_8(%arg0: i32, %arg1: i32) -> (i32, i32, i32) {
    %c0_i32 = arith.constant 0 : i32
    %c0_i32_0 = arith.constant 0 : i32
    %c0_i32_1 = arith.constant 0 : i32
    return %arg0, %c0_i32, %c0_i32_0 : i32, i32, i32
  }
}

</mosaic_0001>

<bundles_post_ra>
// kernel: gpt_forward.3
= control target key start
LH: loop header
LB: loop body
LE: loop exit
PB: predicated region body
PF: predicated region fallthrough
CT: control target
= control target key end

     0   :  { %v106_v0 = vmov 0.0   ;;  %vm107_vm0 = vmmov 0   ;;  %vm35_vm1 = vcmask 261120   ;;  %s138_s1 = inlined_call_operand.vmem [shape: bf16[32,128], index: 1, kind: input, shape index: {}]   ;;  %s139_s0 = inlined_call_operand.vmem [shape: bf16[16,32], index: 0, kind: input, shape index: {}]   ;;  %s140_s2 = inlined_call_operand.vmem [shape: f32[16,128], index: 2, kind: output, shape index: {}]  }
   0x1   :  { %93 = vmatprep.subr.bf16.mxu0 %v106_v0  ;;  %v103_v1 = vld [vmem:[%s138_s1 + $0x8] sm:$0xff]   ;;  %97 = vmatprep.mubr.msk.bf16.mxu0 %vm107_vm0, %v106_v0  ;;  %v104_v2 = vld [vmem:[%s138_s1] sm:$0xff]  }
   0x2   :  { %94 = vmatpush3.bf16.msra.mxu0 %v103_v1  ;;  %v105_v3 = vld [vmem:[%s139_s0] sm:$0xff]  }
   0x3   :  { %95 = vmatprep.subr.bf16.mxu0 %v106_v0 }
   0x6   :  { %96 = vmatpush3.bf16.msra.mxu0 %v104_v2 }
   0x9   :  { %98 = vmatmul.mubr.msk.bf16.vlgmr.msra.gmra.mxu0 %vm35_vm1, %v105_v3 }
  0xc9   :  { %v73_v4 = vpop.f32.mrf.mxu0 }
  0xca   :  { %80 = vst [vmem:[%s140_s2] sm:$0xff] %v73_v4 }
  0xcb   :  { %v99_v5 = vpop.f32.mrf.mxu0 }
  0xcd   :  { %v76_v6 = vpop.f32.mrf.mxu0 }
  0xce   :  { %81 = vst [vmem:[%s140_s2 + $0x8] sm:$0xff] %v76_v6 }
  0xcf   :  { %v100_v7 = vpop.f32.mrf.mxu0 }

// kernel: gpt_forward.2
= control target key start
LH: loop header
LB: loop body
LE: loop exit
PB: predicated region body
PF: predicated region fallthrough
CT: control target
= control target key end

     0   :  { %s2557_s27 = smov 0   ;;  %s2559_s28 = smov 0   ;;  %s2799_s0 = inlined_call_operand.vmem [shape: f32[2,8,32], index: 0, kind: input, shape index: {}]   ;;  %s2800_s1 = inlined_call_operand.vmem [shape: bf16[2,32,96], index: 1, kind: input, shape index: {}]   ;;  %s2801_s2 = inlined_call_operand.vmem [shape: bf16[2,32,32], index: 2, kind: input, shape index: {}]   ;;  %s2802_s3 = inlined_call_operand.vmem [shape: f32[2,6,32], index: 3, kind: input, shape index: {}]   ;;  %s2803_s4 = inlined_call_operand.vmem [shape: bf16[2,32,128], index: 4, kind: input, shape index: {}]   ;;  %s2804_s5 = inlined_call_operand.vmem [shape: f32[2,1,128], index: 5, kind: input, shape index: {}]   ;;  %s2805_s6 = inlined_call_operand.vmem [shape: bf16[2,128,32], index: 6, kind: input, shape index: {}]   ;;  %s2806_s7 = inlined_call_operand.vmem [shape: f32[2,32], index: 7, kind: input, shape index: {}]   ;;  %s2807_s8 = inlined_call_operand.vmem [shape: f32[2,8,32], index: 8, kind: output, shape index: {}]  }
   0x1   :  { %2809 = sst [smem:[#allocation6_spill]] %s2799_s0  ;;  %s2561_s29 = smov 0  }
   0x2   :  { %2810 = sst [smem:[#allocation7_spill]] %s2800_s1  ;;  %s2563_s30 = smov 0  }
   0x3   :  { %2811 = sst [smem:[#allocation8_spill]] %s2801_s2  ;;  %s2565_s9 = smov 0  }
   0x4 LB: > { %2812 = sst [smem:[#allocation3_spill]] %s2494_s30  ;;  %s27_s10 = sadd.s32 1, %s2490_s29  ;;  %s2498_s9 = sphi %s2565_s9, %s18_s9   ;;  %s2494_s30 = sphi %s2563_s30, %s2820_s30   ;;  %s2490_s29 = sphi %s2561_s29, %s2822_s29   ;;  %s2486_s28 = sphi %s2559_s28, %s2818_s28   ;;  %s2482_s27 = sphi %s2557_s27, %s2821_s27  }
   0x5   : > { %s30_s11 = sadd.s32 1, %s2494_s30  ;;  %p28_p0 = scmp.ge.s32.totalorder %s27_s10, 2 }
   0x6   : > { %p2192_p1 = scmp.ge.s32.totalorder %s2498_s9, 1  ;;  %p330_p2 = scmp.lt.s32.totalorder %s2498_s9, 5 }
   0x7   : > { %s2824_s10 = smov (%p28_p0, %s27_s10), 0  ;;  %s2826_s11 = smov (!%p28_p0, %s30_s11), %s2494_s30 }
   0x8   : > { %2813 = sst [smem:[#allocation4_spill]] %s2824_s10  ;;  %p331_p3 = pnand %p2192_p1, %p330_p2 }
   0x9   : > { %p32_p4 = scmp.ge.s32.totalorder %s2826_s11, 2  ;;  %p389_p5 = scmp.lt.s32.totalorder (!%p331_p3), %s2486_s28, 1 }
   0xa   : > { %334 = sbr.rel (%p331_p3) target bundleno = 3132 (0xc3c), region = 52  ;;  %p393_p6 = scmp.lt.s32.totalorder (!%p331_p3), %s2482_s27, 1 }
   0xb   : > { %s2828_s11 = smov (%p32_p4, %s2826_s11), 0  ;;  %s2815_s0 = sld [smem:[#allocation6_spill]] (!%p331_p3) }
   0xc   : > { %2814 = sst [smem:[#allocation5_spill]] %s2828_s11  ;;  %p2204_p7 = scmp.ne.s32.totalorder (!%p331_p3), %s2482_s27, 0 }
   0xd   : > { %s2816_s1 = sld [smem:[#allocation7_spill]] (!%p331_p3) }
   0xe   : > { %s2817_s2 = sld [smem:[#allocation8_spill]] (!%p331_p3) }
   0xf   : > { %s2830_s28 = smov (!%p389_p5, %s2486_s28), 1 }
  0x10   : > { %s2591_s12 = scalar_select %p393_p6, %s2482_s27, 1 }
  0x11   : > { %s2193_s13 = sshll.u32 %s2830_s28, 3 }
  0x12   : > { %s392_s16 = scalar_lea.vmem %s2815_s0, %s2193_s13  ;;  %s2248_s17 = sshll.u32 %s2591_s12, 4 }
  0x13   : > { %s2600_s20 = scalar_lea.vmem %s2816_s1, %s2248_s17  ;;  %s2198_s24 = sshll.u32 %s2591_s12, 3 }
  0x14   : > { %s2605_s23 = scalar_lea.vmem %s2817_s2, %s2248_s17  ;;  %s2611_s28 = scalar_lea.vmem %s2803_s4, %s2248_s17 }
  0x15   : > { %s2616_s15 = scalar_lea.vmem %s2802_s3, %s2198_s24  ;;  %s414_s19 = scalar_lea.vmem %s2804_s5, %s2591_s12 }
  0x16   : > { %s2251_s1 = sshll.u32 %s2591_s12, 6  ;;  %s2626_s22 = scalar_lea.vmem %s2807_s8, %s2193_s13 }
  0x17   : > { %s2631_s17 = scalar_lea.vmem %s2805_s6, %s2251_s1  ;;  %428 = sbr.rel (%p2204_p7) target bundleno = 30 (0x1e), region = 56 }
  0x1c   : > { %v429_v0 = vld [vmem:[%s392_s16] sm:$0xff]  ;;  %vm430_vm0 = vcmask 261120  }
  0x1d   : > { %431 = vst.msk [vmem:[#allocation2] sm:$0xff] %vm430_vm0, %v429_v0 }
  0x1e PF: > { %vm439_vm1 = vcmask 261120   ;;  %v2422_v8 = vld [vmem:[%s2600_s20 + $0x8] sm:$0xff]   ;;  %v2500_v9 = vmov 0.0   ;;  %vm2501_vm2 = vmmov 0   ;;  %v2423_v10 = vld [vmem:[%s2600_s20] sm:$0xff]   ;;  %s2502_s0 = smov 104   ;;  %v968_v40 = vlaneseq }
  0x1f   : > { %2286 = vmatprep.subr.bf16.mxu1 %v2500_v9  ;;  %2290 = vmatprep.mubr.msk.bf16.mxu1 %vm2501_vm2, %v2500_v9  ;;  %v2205_v15 = vld [vmem:[%s2616_s15] ss:$0 sm:$0xff]  ;;  %v2206_v17 = vld [vmem:[%s2616_s15 + $0x1] ss:$0 sm:$0xff]  ;;  %s2503_s1 = smov 120   ;;  %s2504_s2 = smov 112  }
  0x20   : > { %2287 = vmatpush3.bf16.msra.mxu1 %v2422_v8  ;;  %2314 = vmatprep.subr.mxu0 %v2500_v9  ;;  %s2505_s30 = smov 96   ;;  %vm679_vm3 = vcmask 64512   ;;  %v2684_v41 = vshrl.u32 %v968_v40, 7  ;;  %v971_v42 = vand.u32 127, %v968_v40  ;;  %s2506_s10 = smov 64   ;;  %vm1744_vm5 = vcmask 130048  }
  0x21   : > { %2288 = vmatprep.subr.bf16.mxu1 %v2500_v9  ;;  %2316 = vmatprep.mubr.msk.f32.mxu0 %vm2501_vm2, %v2500_v9  ;;  %s2509_s11 = smov 16   ;;  %s2510_s13 = smov 8   ;;  %vm1746_vm6 = vcmask 195584  }
  0x22   : > { %vm972_vm4 = vcmp.le.s32.totalorder %v971_v42, %v2684_v41  ;;  %s2511_s16 = smov 24   ;;  %p2243_p8 = scmp.ne.s32.totalorder %s2482_s27, 1 }
  0x24   : > { %v2634_v1 = vld [vmem:[#allocation2] sm:$0xff]  ;;  %2289 = vmatpush3.bf16.msra.mxu1 %v2423_v10 }
  0x25   : > { %v440_v2 = vsel %vm439_vm1, %v2634_v1, 0.0  ;;  %2294 = vmatprep.subr.mxu1 %v2500_v9 }
  0x26   : > { %441 = vadd.xlane.f32.xlu0 %v440_v2 }
  0xaf   : > { %v442_v3 = vpop.xlane.xlu0 %441 }
  0xb0   : > { %v444_v4 = vmul.f32 0.03125, %v442_v3 }
  0xb2   : > { %v445_v5 = vsub.f32 %v2634_v1, %v444_v4 }
  0xb4   : > { %v446_v6 = vmul.f32 %v445_v5, %v445_v5 }
  0xb6   : > { %v447_v7 = vsel %vm439_vm1, %v446_v6, 0.0 }
  0xb7   : > { %448 = vadd.xlane.f32.xlu0 %v447_v7 }
 0x140   : > { %v449_v11 = vpop.xlane.xlu0 %448 }
 0x141   : > { %v450_v12 = vmul.f32 0.032258064, %v449_v11 }
 0x143   : > { %v451_v13 = vadd.f32 1e-05, %v450_v12 }
 0x145   : > { %2436 = vrsqrt.f32 %v451_v13 }
 0x152   : > { %v2437_v14 = vpop.eup %2436 }
 0x153   : > { %v453_v16 = vmul.f32 %v2437_v14, %v445_v5 }
 0x155   : > { %v458_v18 = vmul.f32 %v2205_v15, %v453_v16 }
 0x157   : > { %v463_v19 = vadd.f32 %v2206_v17, %v458_v18 }
 0x159   : > { %v464_v20 = vpack.c.bf16 %v463_v19, %v463_v19 }
 0x15b   : > { %2291 = vmatmul.mubr.msk.bf16.vlgmr.msra.gmra.mxu1 %vm439_vm1, %v464_v20 }
 0x15c   : > { %2296 = vmatprep.mubr.msk.f32.mxu1 %vm2501_vm2, %v2500_v9 }
 0x21b   : > { %v2655_v21 = vpop.f32.mrf.mxu1 }
 0x21c   : > { %537 = vrot.lane.b32.xlu0 %v2655_v21, %s2502_s0  ;;  %533 = vrot.lane.b32.xlu1 %v2655_v21, %s2503_s1  ;;  %v524_v23 = vmul.f32 0.35355338, %v2655_v21 }
 0x21d   : > { %v2292_v22 = vpop.f32.mrf.mxu1 }
 0x21f   : > { %v521_v24 = vpop.f32.mrf.mxu1 }
 0x220   : > { %535 = vrot.lane.b32.xlu1 %v2655_v21, %s2504_s2  ;;  %530 = vrot.lane.b32.xlu0 %v524_v23, %s2502_s0 }
 0x221   : > { %v2293_v25 = vpop.f32.mrf.mxu1 }
 0x224   : > { %539 = vrot.lane.b32.xlu1 %v2655_v21, %s2505_s30 }
 0x28e   : > { %v2662_v26 = vpop.permute.xlu1 %533  ;;  %v2665_v28 = vpop.permute.xlu0 %537 }
 0x28f   : > { %541 = vrot.lane.b32.xlu1 %v2662_v26, %s2505_s30 }
 0x292   : > { %v536_v27 = vpop.permute.xlu1 %535  ;;  %v531_v36 = vpop.permute.xlu0 %530 }
 0x293   : > { %543 = vrot.lane.b32.xlu1 %v536_v27, %s2505_s30 }
 0x296   : > { %v540_v29 = vpop.permute.xlu1 %539 }
 0x297   : > { %545 = vrot.lane.b32.xlu1 %v2665_v28, %s2505_s30 }
 0x29b   : > { %526 = vrot.lane.b32.xlu1 %v524_v23, %s2503_s1 }
 0x29f   : > { %528 = vrot.lane.b32.xlu1 %v524_v23, %s2504_s2 }
 0x2c8   : > { %551 = vxpose.xlu1.b32.start.end [1/1] (short) (narrow) %v540_v29, 8 }
 0x301   : > { %v542_v30 = vpop.permute.xlu1 %541 }
 0x302   : > { %583 = vxpose.xlu0.b32.start.end [1/1] (short) (narrow) %v542_v30, 8 }
 0x305   : > { %v544_v31 = vpop.permute.xlu1 %543 }
 0x306   : > { %615 = vxpose.xlu0.b32.start.end [1/1] (short) (narrow) %v544_v31, 8 }
 0x309   : > { %v546_v32 = vpop.permute.xlu1 %545 }
 0x30a   : > { %647 = vxpose.xlu0.b32.start.end [1/1] (short) (narrow) %v546_v32, 8 }
 0x30d   : > { %v527_v33 = vpop.permute.xlu1 %526 }
 0x311   : > { %v529_v34 = vpop.permute.xlu1 %528 }
 0x344   : > { %v567_v35 = vpop.trf.xlu1 }
 0x345   : > { %2295 = vmatpush3.msra.mxu1 %v567_v35 }
 0x346   : > { %2297 = vmatmul.mubr.msk.f32.vlgmr.msra.gmra.mxu1 %vm679_vm3, %v524_v23  ;;  %2299 = vmatprep.subr.mxu1 %v2500_v9 }
 0x347   : > { %2301 = vmatprep.mubr.msk.f32.mxu1 %vm2501_vm2, %v2500_v9 }
 0x37e   : > { %v599_v37 = vpop.trf.xlu0 }
 0x37f   : > { %2300 = vmatpush3.msra.mxu1 %v599_v37 }
 0x380   : > { %2302 = vmatmul.mubr.msk.f32.vlgmr.msra.gmra.mxu1 %vm679_vm3, %v527_v33  ;;  %2304 = vmatprep.subr.mxu1 %v2500_v9 }
 0x381   : > { %2306 = vmatprep.mubr.msk.f32.mxu1 %vm2501_vm2, %v2500_v9 }
 0x382   : > { %v631_v38 = vpop.trf.xlu0 }
 0x383   : > { %2305 = vmatpush3.msra.mxu1 %v631_v38 }
 0x384   : > { %2307 = vmatmul.mubr.msk.f32.vlgmr.msra.gmra.mxu1 %vm679_vm3, %v529_v34  ;;  %2309 = vmatprep.subr.mxu1 %v2500_v9 }
 0x385   : > { %2311 = vmatprep.mubr.msk.f32.mxu1 %vm2501_vm2, %v2500_v9 }
 0x386   : > { %v663_v39 = vpop.trf.xlu0 }
 0x387   : > { %2310 = vmatpush3.msra.mxu1 %v663_v39 }
 0x388   : > { %2312 = vmatmul.mubr.msk.f32.vlgmr.msra.gmra.mxu1 %vm679_vm3, %v531_v36  ;;  %2319 = vmatprep.subr.mxu1 %v2500_v9 }
 0x389   : > { %2321 = vmatprep.mubr.msk.f32.mxu1 %vm2501_vm2, %v2500_v9 }
 0x406   : > { %v748_v43 = vpop.f32.mrf.mxu1 }
 0x407   : > { %v975_v44 = vsel %vm972_vm4, %v748_v43, -inf }
 0x408   : > { %v2298_v45 = vpop.f32.mrf.mxu1  ;;  %v979_v46 = vsel %vm679_vm3, %v975_v44, -inf }
 0x409   : > { %980 = vmax.xlane.f32.xlu0 %v979_v46  ;;  %v2507_v46 = vmov 1983009808  }
 0x41f   : > { %1023 = vrot.lane.b32.xlu0 %v2655_v21, %s2506_s10 }
 0x423   : > { %1027 = vrot.lane.b32.xlu0 %v536_v27, %s2506_s10 }
 0x440   : > { %v820_v47 = vpop.f32.mrf.mxu1 }
 0x441   : > { %v976_v48 = vsel %vm972_vm4, %v820_v47, -inf  ;;  %v1598_v47 = vunpack.c.l.s4 %v2507_v46 }
 0x442   : > { %v2303_v49 = vpop.f32.mrf.mxu1  ;;  %v982_v50 = vsel %vm679_vm3, %v976_v48, -inf }
 0x443   : > { %983 = vmax.xlane.f32.xlu1 %v982_v50  ;;  %v2508_v49 = vmov 1934713408  }
 0x444   : > { %v892_v51 = vpop.f32.mrf.mxu1  ;;  %v1630_v50 = vunpack.c.l.s4 %v2508_v49 }
 0x445   : > { %v977_v52 = vsel %vm972_vm4, %v892_v51, -inf }
 0x446   : > { %v2308_v53 = vpop.f32.mrf.mxu1  ;;  %v985_v54 = vsel %vm679_vm3, %v977_v52, -inf }
 0x447   : > { %986 = vmax.xlane.f32.xlu1 %v985_v54  ;;  %v1631_v54 = vunpack.c.0.s8 %v1630_v50 }
 0x448   : > { %v964_v55 = vpop.f32.mrf.mxu1 }
 0x449   : > { %v978_v56 = vsel %vm972_vm4, %v964_v55, -inf }
 0x44a   : > { %v2313_v57 = vpop.f32.mrf.mxu1  ;;  %v988_v58 = vsel %vm679_vm3, %v978_v56, -inf }
 0x44b   : > { %989 = vmax.xlane.f32.xlu1 %v988_v58 }
 0x45c   : > { %1025 = vrot.lane.b32.xlu1 %v2662_v26, %s2506_s10 }
 0x460   : > { %1029 = vrot.lane.b32.xlu1 %v2665_v28, %s2506_s10 }
 0x492   : > { %v981_v59 = vpop.xlane.xlu0 %980 }
 0x493   : > { %v991_v60 = vsub.f32 %v975_v44, %v981_v59 }
 0x495   : > { %v995_v61 = vmul.f32 1.442695, %v991_v60 }
 0x496   : > { %v1024_v17 = vpop.permute.xlu0 %1023 }
 0x497   : > { %2438 = vpow2.f32 %v995_v61  ;;  %v1634_v61 = vsub.s32 %v1631_v54, %v2684_v41  ;;  %v2427_v54 = vld [vmem:[%s2611_s28] sm:$0xff]  }
 0x49a   : > { %v1028_v19 = vpop.permute.xlu0 %1027 }
 0x4a4   : > { %v2439_v62 = vpop.eup %2438 }
 0x4a5   : > { %v1003_v63 = vsel %vm679_vm3, %v2439_v62, 0.0 }
 0x4a6   : > { %1004 = vadd.xlane.f32.xlu1 %v1003_v63 }
 0x4cc   : > { %v984_v0 = vpop.xlane.xlu1 %983 }
 0x4cd   : > { %v992_v2 = vsub.f32 %v976_v48, %v984_v0 }
 0x4cf   : > { %v997_v3 = vmul.f32 1.442695, %v992_v2 }
 0x4d0   : > { %v987_v4 = vpop.xlane.xlu1 %986 }
 0x4d1   : > { %2440 = vpow2.f32 %v997_v3  ;;  %v993_v5 = vsub.f32 %v977_v52, %v987_v4  ;;  %v1599_v52 = vunpack.c.0.s8 %v1598_v47 }
 0x4d3   : > { %v999_v6 = vmul.f32 1.442695, %v993_v5  ;;  %v1602_v55 = vsub.s32 %v1599_v52, %v2684_v41 }
 0x4d4   : > { %v990_v7 = vpop.xlane.xlu1 %989 }
 0x4d5   : > { %2442 = vpow2.f32 %v999_v6  ;;  %v994_v8 = vsub.f32 %v978_v56, %v990_v7  ;;  %v2424_v7 = vld [vmem:[%s2605_s23 + $0x8] sm:$0xff]  }
 0x4d7   : > { %v1001_v10 = vmul.f32 1.442695, %v994_v8 }
 0x4d8   : > { %v1026_v18 = vpop.permute.xlu1 %1025 }
 0x4d9   : > { %2444 = vpow2.f32 %v1001_v10 }
 0x4dc   : > { %v1030_v20 = vpop.permute.xlu1 %1029 }
 0x4de   : > { %v2441_v11 = vpop.eup %2440 }
 0x4df   : > { %v1006_v12 = vsel %vm679_vm3, %v2441_v11, 0.0 }
 0x4e0   : > { %1007 = vadd.xlane.f32.xlu0 %v1006_v12 }
 0x4e2   : > { %v2443_v13 = vpop.eup %2442 }
 0x4e3   : > { %v1009_v14 = vsel %vm679_vm3, %v2443_v13, 0.0 }
 0x4e4   : > { %1010 = vadd.xlane.f32.xlu1 %v1009_v14 }
 0x4e6   : > { %v2445_v15 = vpop.eup %2444 }
 0x4e7   : > { %v1012_v16 = vsel %vm679_vm3, %v2445_v15, 0.0 }
 0x4e8   : > { %1013 = vadd.xlane.f32.xlu0 %v1012_v16  ;;  %v2425_v16 = vld [vmem:[%s2605_s23] sm:$0xff]  }
 0x515   : > { %1035 = vxpose.xlu0.b32.start.end [1/1] (short) (narrow) %v1024_v17, 8 }
 0x517   : > { %1067 = vxpose.xlu1.b32.start.end [1/1] (short) (narrow) %v1026_v18, 8 }
 0x519   : > { %1099 = vxpose.xlu0.b32.start.end [1/1] (short) (narrow) %v1028_v19, 8 }
 0x51d   : > { %1131 = vxpose.xlu0.b32.start.end [1/1] (short) (narrow) %v1030_v20, 8 }
 0x52f   : > { %v1005_v21 = vpop.xlane.xlu1 %1004 }
 0x530   : > { %2446 = vrcp.f32 %v1005_v21 }
 0x53d   : > { %v2447_v22 = vpop.eup %2446 }
 0x53e   : > { %v1019_v23 = vmul.f32 %v2447_v22, %v2439_v62 }
 0x540   : > { %2315 = vmatpush3.xpose.msk.msra.mxu0 %vm679_vm3, %v1019_v23 }
 0x541   : > { %2324 = vmatprep.subr.mxu0 %v2500_v9 }
 0x569   : > { %v1008_v24 = vpop.xlane.xlu0 %1007 }
 0x56a   : > { %2448 = vrcp.f32 %v1008_v24 }
 0x56d   : > { %v1011_v27 = vpop.xlane.xlu1 %1010 }
 0x56e   : > { %2450 = vrcp.f32 %v1011_v27 }
 0x571   : > { %v1014_v28 = vpop.xlane.xlu0 %1013 }
 0x572   : > { %2452 = vrcp.f32 %v1014_v28 }
 0x577   : > { %v2449_v25 = vpop.eup %2448 }
 0x578   : > { %v1020_v26 = vmul.f32 %v2449_v25, %v2441_v11 }
 0x57a   : > { %2320 = vmatpush3.xpose.msk.msra.mxu1 %vm679_vm3, %v1020_v26 }
 0x57b   : > { %2329 = vmatprep.subr.mxu1 %v2500_v9  ;;  %v2451_v29 = vpop.eup %2450 }
 0x57c   : > { %v1021_v32 = vmul.f32 %v2451_v29, %v2443_v13 }
 0x57f   : > { %v2453_v30 = vpop.eup %2452 }
 0x580   : > { %v1022_v34 = vmul.f32 %v2453_v30, %v2445_v15 }
 0x591   : > { %v1051_v31 = vpop.trf.xlu0 }
 0x592   : > { %2317 = vmatmul.mubr.msk.f32.vlgmr.msra.gmra.mxu0 %vm679_vm3, %v1051_v31 }
 0x593   : > { %2325 = vmatpush3.xpose.msk.msra.mxu0 %vm679_vm3, %v1021_v32  ;;  %v1083_v33 = vpop.trf.xlu1  ;;  %2326 = vmatprep.mubr.msk.f32.mxu0 %vm2501_vm2, %v2500_v9 }
 0x594   : > { %2322 = vmatmul.mubr.msk.f32.vlgmr.msra.gmra.mxu1 %vm679_vm3, %v1083_v33  ;;  %2334 = vmatprep.subr.bf16.mxu0 %v2500_v9 }
 0x595   : > { %2330 = vmatpush3.xpose.msk.msra.mxu1 %vm679_vm3, %v1022_v34  ;;  %v1115_v35 = vpop.trf.xlu0  ;;  %2331 = vmatprep.mubr.msk.f32.mxu1 %vm2501_vm2, %v2500_v9 }
 0x596   : > { %2327 = vmatmul.mubr.msk.f32.vlgmr.msra.gmra.mxu0 %vm679_vm3, %v1115_v35  ;;  %2342 = vmatprep.subr.bf16.mxu1 %v2500_v9 }
 0x597   : > { %2338 = vmatprep.mubr.msk.bf16.mxu0 %vm2501_vm2, %v2500_v9  ;;  %2335 = vmatpush3.bf16.msra.mxu0 %v2424_v7  ;;  %v2433_v7 = vld [vmem:[%s2631_s17 + $0x10] sm:$0xff]  }
 0x598   : > { %2336 = vmatprep.subr.bf16.mxu0 %v2500_v9 }
 0x599   : > { %v1147_v36 = vpop.trf.xlu0 }
 0x59a   : > { %2332 = vmatmul.mubr.msk.f32.vlgmr.msra.gmra.mxu1 %vm679_vm3, %v1147_v36 }
 0x59b   : > { %2346 = vmatprep.mubr.msk.bf16.mxu1 %vm2501_vm2, %v2500_v9  ;;  %2337 = vmatpush3.bf16.msra.mxu0 %v2425_v16 }
 0x59c   : > { %2350 = vmatprep.subr.bf16.mxu0 %v2500_v9 }
 0x652   : > { %v1235_v37 = vpop.f32.mrf.mxu0 }
 0x653   : > { %1467 = vxpose.xlu0.b32.start.end [1/1] (short) (narrow) %v1235_v37, 8 }
 0x654   : > { %v2318_v38 = vpop.f32.mrf.mxu0  ;;  %v1311_v39 = vpop.f32.mrf.mxu1 }
 0x655   : > { %1499 = vxpose.xlu1.b32.start.end [1/1] (short) (narrow) %v1311_v39, 8 }
 0x656   : > { %v1387_v40 = vpop.f32.mrf.mxu0  ;;  %v2323_v42 = vpop.f32.mrf.mxu1 }
 0x657   : > { %1531 = vxpose.xlu0.b32.start.end [1/1] (short) (narrow) %v1387_v40, 8  ;;  %v2227_v40 = vld [vmem:[%s2616_s15 + $0x2] ss:$0 sm:$0xff] }
 0x658   : > { %v2328_v43 = vpop.f32.mrf.mxu0 }
 0x65a   : > { %v1463_v44 = vpop.f32.mrf.mxu1 }
 0x65b   : > { %1563 = vxpose.xlu1.b32.start.end [1/1] (short) (narrow) %v1463_v44, 8 }
 0x65c   : > { %v2333_v45 = vpop.f32.mrf.mxu1 }
 0x6cf   : > { %v1483_v48 = vpop.trf.xlu0 }
 0x6d1   : > { %v1515_v51 = vpop.trf.xlu1 }
 0x6d3   : > { %v1547_v53 = vpop.trf.xlu0 }
 0x6d4   : > { %v1595_v56 = vcombine.low %v1483_v48, %v1547_v53  ;;  %v1596_v57 = vcombine.high %v1483_v48, %v1547_v53 }
 0x6d6   : > { %v1603_v62 = vrot.slane %v1595_v56, %v1602_v55  ;;  %v1610_v63 = vrot.slane %v1596_v57, %v1602_v55 }
 0x6d7   : > { %v1579_v58 = vpop.trf.xlu1 }
 0x6d8   : > { %v1611_v59 = vcombine.low %v1515_v51, %v1579_v58  ;;  %v1612_v60 = vcombine.high %v1515_v51, %v1579_v58 }
 0x6da   : > { %v1619_v0 = vrot.slane %v1611_v59, %v1602_v55  ;;  %v1626_v2 = vrot.slane %v1612_v60, %v1602_v55  ;;  %v2228_v59 = vld [vmem:[%s2616_s15 + $0x3] ss:$0 sm:$0xff] }
 0x6dc   : > { %v1627_v3 = vcombine.low %v1603_v62, %v1619_v0  ;;  %v1628_v4 = vcombine.high %v1603_v62, %v1619_v0  ;;  %v1643_v5 = vcombine.low %v1610_v63, %v1626_v2  ;;  %v1644_v6 = vcombine.high %v1610_v63, %v1626_v2  ;;  %v2428_v2 = vld [vmem:[%s2631_s17 + $0x38] sm:$0xff]  }
 0x6de   : > { %v1635_v8 = vrot.slane %v1627_v3, %v1634_v61  ;;  %v1642_v10 = vrot.slane %v1628_v4, %v1634_v61  ;;  %v1651_v11 = vrot.slane %v1643_v5, %v1634_v61  ;;  %v1658_v12 = vrot.slane %v1644_v6, %v1634_v61  ;;  %v2429_v3 = vld [vmem:[%s2631_s17 + $0x30] sm:$0xff]   ;;  %v2430_v4 = vld [vmem:[%s2631_s17 + $0x28] sm:$0xff]   ;;  %v2431_v5 = vld [vmem:[%s2631_s17 + $0x20] sm:$0xff]  }
 0x6df   : > { %v2432_v6 = vld [vmem:[%s2631_s17 + $0x18] sm:$0xff]  }
 0x6e0   : > { %v1663_v13 = vcombine.low %v1635_v8, %v1642_v10  ;;  %v2222_v14 = vcombine.high %v1635_v8, %v1642_v10  ;;  %v1679_v41 = vcombine.low %v1651_v11, %v1658_v12  ;;  %v2223_v15 = vcombine.high %v1651_v11, %v1658_v12  ;;  %v2434_v8 = vld [vmem:[%s2631_s17 + $0x8] sm:$0xff]   ;;  %v2435_v10 = vld [vmem:[%s2631_s17] sm:$0xff]  }
 0x6e1   : > { %v2230_v11 = vld [vmem:[%s414_s19] ss:$0 sm:$0xff] }
 0x6e2   : > { %v1670_v17 = vrot.slane %v1663_v13, %v1602_v55  ;;  %v1678_v18 = vrot.slane %v2222_v14, %v1602_v55  ;;  %v1686_v19 = vrot.slane %v1679_v41, %v1602_v55  ;;  %v1694_v20 = vrot.slane %v2223_v15, %v1602_v55 }
 0x6e4   : > { %v1696_v21 = vcombine.high %v1670_v17, %v1678_v18  ;;  %v1712_v22 = vcombine.high %v1686_v19, %v1694_v20  ;;  %v1695_v23 = vcombine.low %v1670_v17, %v1678_v18  ;;  %v1711_v24 = vcombine.low %v1686_v19, %v1694_v20 }
 0x6e6   : > { %v1710_v25 = vrot.slane %v1696_v21, %v1634_v61  ;;  %v1726_v26 = vrot.slane %v1712_v22, %v1634_v61  ;;  %v1703_v27 = vrot.slane %v1695_v23, %v1634_v61  ;;  %v1719_v28 = vrot.slane %v1711_v24, %v1634_v61  ;;  %v2229_v61 = vld [vmem:[%s2616_s15 + $0x4] ss:$0 sm:$0xff] }
 0x6e8   : > { %v1729_v29 = vcombine.low %v1710_v25, %v1726_v26  ;;  %v1728_v30 = vcombine.high %v1703_v27, %v1719_v28  ;;  %v1727_v31 = vcombine.low %v1703_v27, %v1719_v28  ;;  %v1730_v32 = vcombine.high %v1710_v25, %v1726_v26  ;;  %v2242_v25 = vld [vmem:[%s2616_s15 + $0x5] ss:$0 sm:$0xff] }
 0x6ea   : > { %1736 = vrot.lane.b32.xlu1 %v1729_v29, %s2509_s11  ;;  %1732 = vrot.lane.b32.xlu0 %v1728_v30, %s2510_s13 }
 0x6ee   : > { %1740 = vrot.lane.b32.xlu1 %v1730_v32, %s2511_s16 }
 0x75c   : > { %v1737_v33 = vpop.permute.xlu1 %1736  ;;  %v1733_v34 = vpop.permute.xlu0 %1732 }
 0x75d   : > { %v1743_v35 = vsel %vm679_vm3, %v1727_v31, %v1733_v34 }
 0x75e   : > { %v1745_v37 = vsel %vm1744_vm5, %v1743_v35, %v1737_v33 }
 0x760   : > { %v1741_v36 = vpop.permute.xlu1 %1740 }
 0x761   : > { %v1747_v38 = vsel %vm1746_vm6, %v1745_v37, %v1741_v36 }
 0x762   : > { %v1748_v39 = vpack.c.bf16 %v1747_v38, %v1747_v38 }
 0x764   : > { %2339 = vmatmul.mubr.msk.bf16.vlgmr.msra.gmra.mxu0 %vm439_vm1, %v1748_v39 }
 0x765   : > { %2366 = vmatprep.mubr.msk.bf16.mxu0 %vm2501_vm2, %v2500_v9  ;;  %2351 = vmatpush3.bf16.msra.mxu0 %v2428_v2 }
 0x766   : > { %2352 = vmatprep.subr.bf16.mxu0 %v2500_v9 }
 0x769   : > { %2353 = vmatpush3.bf16.msra.mxu0 %v2429_v3 }
 0x76a   : > { %2354 = vmatprep.subr.bf16.mxu0 %v2500_v9 }
 0x76d   : > { %2355 = vmatpush3.bf16.msra.mxu0 %v2430_v4 }
 0x76e   : > { %2356 = vmatprep.subr.bf16.mxu0 %v2500_v9 }
 0x771   : > { %2357 = vmatpush3.bf16.msra.mxu0 %v2431_v5 }
 0x772   : > { %2358 = vmatprep.subr.bf16.mxu0 %v2500_v9 }
 0x775   : > { %2359 = vmatpush3.bf16.msra.mxu0 %v2432_v6 }
 0x776   : > { %2360 = vmatprep.subr.bf16.mxu0 %v2500_v9 }
 0x779   : > { %2361 = vmatpush3.bf16.msra.mxu0 %v2433_v7 }
 0x77a   : > { %2362 = vmatprep.subr.bf16.mxu0 %v2500_v9 }
 0x77d   : > { %2363 = vmatpush3.bf16.msra.mxu0 %v2434_v8 }
 0x77e   : > { %2364 = vmatprep.subr.bf16.mxu0 %v2500_v9 }
 0x781   : > { %2365 = vmatpush3.bf16.msra.mxu0 %v2435_v10 }
 0x824   : > { %v1802_v42 = vpop.f32.mrf.mxu0 }
 0x825   : > { %v1808_v43 = vadd.f32 %v1802_v42, %v2634_v1  ;;  %v2426_v1 = vld [vmem:[%s2611_s28 + $0x8] sm:$0xff]  }
 0x826   : > { %v2340_v44 = vpop.f32.mrf.mxu0  ;;  %2343 = vmatpush3.bf16.msra.mxu1 %v2426_v1 }
 0x827   : > { %v2738_v45 = vadd.f32 %v2227_v40, %v1808_v43  ;;  %2344 = vmatprep.subr.bf16.mxu1 %v2500_v9 }
 0x828   : > { %v1805_v46 = vpop.f32.mrf.mxu0 }
 0x829   : > { %v1814_v47 = vsel %vm439_vm1, %v2738_v45, 0.0 }
 0x82a   : > { %1815 = vadd.xlane.f32.xlu1 %v1814_v47  ;;  %v2341_v48 = vpop.f32.mrf.mxu0  ;;  %2345 = vmatpush3.bf16.msra.mxu1 %v2427_v54 }
 0x8b3   : > { %v1816_v49 = vpop.xlane.xlu1 %1815 }
 0x8b4   : > { %v1817_v50 = vmul.f32 0.03125, %v1816_v49 }
 0x8b6   : > { %v1818_v51 = vsub.f32 %v2738_v45, %v1817_v50 }
 0x8b8   : > { %v1819_v52 = vmul.f32 %v1818_v51, %v1818_v51 }
 0x8ba   : > { %v1820_v53 = vsel %vm439_vm1, %v1819_v52, 0.0 }
 0x8bb   : > { %1821 = vadd.xlane.f32.xlu0 %v1820_v53 }
 0x944   : > { %v1822_v55 = vpop.xlane.xlu0 %1821 }
 0x945   : > { %v1823_v56 = vmul.f32 0.032258064, %v1822_v55 }
 0x947   : > { %v1824_v57 = vadd.f32 1e-05, %v1823_v56 }
 0x949   : > { %2454 = vrsqrt.f32 %v1824_v57 }
 0x956   : > { %v2455_v58 = vpop.eup %2454 }
 0x957   : > { %v1826_v60 = vmul.f32 %v2455_v58, %v1818_v51 }
 0x959   : > { %v1831_v62 = vmul.f32 %v2228_v59, %v1826_v60 }
 0x95b   : > { %v1836_v63 = vadd.f32 %v2229_v61, %v1831_v62 }
 0x95d   : > { %v1837_v0 = vpack.c.bf16 %v1836_v63, %v1836_v63 }
 0x95f   : > { %2347 = vmatmul.mubr.msk.bf16.vlgmr.msra.gmra.mxu1 %vm439_vm1, %v1837_v0 }
 0xa1f   : > { %v1898_v12 = vpop.f32.mrf.mxu1 }
 0xa20   : > { %v1899_v13 = vadd.f32 %v2230_v11, %v1898_v12 }
 0xa21   : > { %v2348_v14 = vpop.f32.mrf.mxu1 }
 0xa22   : > { %v1905_v41 = vmul.f32 %v1899_v13, %v1899_v13  ;;  %v1904_v9 = vmul.f32 0.5, %v1899_v13 }
 0xa23   : > { %v1901_v15 = vpop.f32.mrf.mxu1 }
 0xa24   : > { %v1906_v16 = vmul.f32 %v1905_v41, %v1899_v13 }
 0xa25   : > { %v2349_v17 = vpop.f32.mrf.mxu1 }
 0xa26   : > { %v1907_v18 = vmul.f32 0.044715, %v1906_v16 }
 0xa28   : > { %v1908_v19 = vadd.f32 %v1907_v18, %v1899_v13 }
 0xa2a   : > { %v1909_v20 = vmul.f32 0.7978845, %v1908_v19 }
 0xa2c   : > { %2456 = vtanh.f32 %v1909_v20 }
 0xa39   : > { %v2457_v21 = vpop.eup %2456 }
 0xa3a   : > { %v1911_v22 = vadd.f32 1.0, %v2457_v21 }
 0xa3c   : > { %v1912_v23 = vmul.f32 %v1911_v22, %v1904_v9 }
 0xa3e   : > { %v1913_v24 = vpack.c.bf16 %v1912_v23, %v1912_v23 }
 0xa40   : > { %2367 = vmatmul.mubr.bf16.vlgmr.msra.gmra.mxu0 %v1913_v24 }
 0xb00   : > { %v2012_v26 = vpop.f32.mrf.mxu0 }
 0xb01   : > { %v2018_v27 = vadd.f32 %v2012_v26, %v2738_v45 }
 0xb02   : > { %v2368_v28 = vpop.f32.mrf.mxu0  ;;  %2028 = sbr.rel (%p2243_p8) target bundleno = 3132 (0xc3c), region = 60 }
 0xb03   : > { %v2023_v29 = vadd.f32 %v2242_v25, %v2018_v27 }
 0xb04   : > { %v2015_v30 = vpop.f32.mrf.mxu0 }
 0xb05   : > { %2024 = vst.msk [vmem:[#allocation2] sm:$0xff] %vm439_vm1, %v2023_v29 }
 0xb06   : > { %v2369_v31 = vpop.f32.mrf.mxu0 }
 0xb07   : > { %v2031_v32 = vsel %vm439_vm1, %v2023_v29, 0.0  ;;  %v2244_v43 = vld [vmem:[%s2806_s7] ss:$0 sm:$0xff]  ;;  %v2245_v45 = vld [vmem:[%s2806_s7 + $0x1] ss:$0 sm:$0xff] }
 0xb08   : > { %2032 = vadd.xlane.f32.xlu0 %v2031_v32 }
 0xb91   : > { %v2033_v33 = vpop.xlane.xlu0 %2032 }
 0xb92   : > { %v2034_v34 = vmul.f32 0.03125, %v2033_v33 }
 0xb94   : > { %v2035_v35 = vsub.f32 %v2023_v29, %v2034_v34 }
 0xb96   : > { %v2036_v36 = vmul.f32 %v2035_v35, %v2035_v35 }
 0xb98   : > { %v2037_v37 = vsel %vm439_vm1, %v2036_v36, 0.0 }
 0xb99   : > { %2038 = vadd.xlane.f32.xlu0 %v2037_v37 }
 0xc22   : > { %v2039_v38 = vpop.xlane.xlu0 %2038 }
 0xc23   : > { %v2040_v39 = vmul.f32 0.032258064, %v2039_v38 }
 0xc25   : > { %v2041_v40 = vadd.f32 1e-05, %v2040_v39 }
 0xc27   : > { %2458 = vrsqrt.f32 %v2041_v40 }
 0xc34   : > { %v2459_v42 = vpop.eup %2458 }
 0xc35   : > { %v2043_v44 = vmul.f32 %v2459_v42, %v2035_v35 }
 0xc37   : > { %v2048_v46 = vmul.f32 %v2244_v43, %v2043_v44 }
 0xc39   : > { %v2053_v47 = vadd.f32 %v2245_v45, %v2048_v46 }
 0xc3b   : > { %2054 = vst.msk [vmem:[%s2626_s22] sm:$0xff] %vm439_vm1, %v2053_v47 }
 0xc3c PF: > { %s18_s9 = sadd.s32 1, %s2498_s9   ;;  %s2818_s28 = sld [smem:[#allocation3_spill]] }
 0xc3d   : > { %p15_p9 = scmp.ge.s32.totalorder %s18_s9, 6   ;;  %s2819_s26 = sld [smem:[#allocation4_spill]] }
 0xc3e   : > { %s2820_s30 = sld [smem:[#allocation5_spill]]  ;;  %s2821_s27 = smov %s2490_s29 }
 0xc3f   :  { %17 = sbr.rel (!%p15_p9) target bundleno = 4 (0x4), region = 108 }
 0xc43   : > { %s2822_s29 = smov %s2819_s26 }

</bundles_post_ra>
